<compile_context>
chip_gen: v7x
topology: tpu7x:2x2x1
jax: 0.10.0
libtpu: 0.0.40
codegen_flags: <defaults>
</compile_context>

<pallas_src>
import jax
import jax.numpy as jnp
from jax.experimental import pallas as pl
from jax.experimental.pallas import tpu as pltpu


def _conv_matmul_kernel(w_ref, p_ref, b_ref, o_ref):
    """Single grid step.

    w_ref : (Cout, K)   bf16   VMEM  -- weight, K = Cin*KH*KW
    p_ref : (K, Mp)     bf16   VMEM  -- im2col patches (transposed), Mp % 128 == 0
    b_ref : (Cout, 1)   f32    VMEM  -- bias
    o_ref : (Cout, Mp)  f32    VMEM  -- transposed conv output (lane-dense)
    """
    acc = jnp.dot(w_ref[...], p_ref[...], preferred_element_type=jnp.float32)
    o_ref[...] = (acc + b_ref[...]).astype(o_ref.dtype)


def conv_forward(x_nchw, weight_oihw, bias):
    """Equivalent of nn.Conv2d(inp, outp, ker)(x) for NCHW float32 inputs."""
    N, Cin, H, W = x_nchw.shape
    Cout, Cin_w, KH, KW = weight_oihw.shape
    assert Cin == Cin_w
    Ho, Wo = H - KH + 1, W - KW + 1

    K = Cin * KH * KW                      # contraction depth (36 here)
    M = N * Ho * Wo                        # batch folded into the M dimension
    Mp = ((M + 127) // 128) * 128          # pad lanes to a 128-multiple

    # ---- im2col + layout plumbing (wrapper-side, plain XLA) -----------------
    # patches_T[k, m]:  k ordered as (cin, kh, kw)  -> matches weight.reshape
    #                   m ordered as (n, ho, wo)
    slices = [x_nchw[:, :, kh:kh + Ho, kw:kw + Wo]          # (N, Cin, Ho, Wo)
              for kh in range(KH) for kw in range(KW)]
    p = jnp.stack(slices, axis=2)                           # (N, Cin, KH*KW, Ho, Wo)
    patches_T = (p.reshape(N, K, Ho * Wo)
                  .transpose(1, 0, 2)
                  .reshape(K, M))
    patches_T = jnp.pad(patches_T, ((0, 0), (0, Mp - M)))   # (K, Mp)

    w2d = weight_oihw.reshape(Cout, K)                      # k order (cin, kh, kw)
    b2d = bias.reshape(Cout, 1).astype(jnp.float32)

    # bf16 MXU inputs, f32 accumulate inside the kernel.
    w_bf16 = w2d.astype(jnp.bfloat16)
    p_bf16 = patches_T.astype(jnp.bfloat16)

    out_t = pl.pallas_call(
        _conv_matmul_kernel,
        out_shape=jax.ShapeDtypeStruct((Cout, Mp), jnp.float32),
        grid_spec=pltpu.PrefetchScalarGridSpec(
            num_scalar_prefetch=0,
            grid=(1,),                                       # single step: whole problem fits VMEM
            in_specs=[
                pl.BlockSpec((Cout, K), lambda i: (0, 0)),
                pl.BlockSpec((K, Mp), lambda i: (0, 0)),
                pl.BlockSpec((Cout, 1), lambda i: (0, 0)),
            ],
            out_specs=pl.BlockSpec((Cout, Mp), lambda i: (0, 0)),
        ),
        compiler_params=pltpu.CompilerParams(
            dimension_semantics=("arbitrary",),
        ),
        # TODO(synk): for large H/W/Cin, tile M (output rows) and K with a real
        # grid and budget VMEM for v7x's 64 MiB (vs 128 MiB on v5e/v6e).
    )(w_bf16, p_bf16, b2d)

    # Back to PyTorch's NCHW output layout (wrapper-side reshape/transpose).
    out_t = out_t[:, :M]                                    # (Cout, N*Ho*Wo)
    out = out_t.reshape(Cout, N, Ho, Wo).transpose(1, 0, 2, 3)
    return out.astype(x_nchw.dtype)                         # (N, Cout, Ho, Wo)


if __name__ == "__main__":
    # Module hyper-params: conv(inp=4, outp=8, ker=3)
    inp, outp, ker = 4, 8, 3
    N, H, W = 2, 16, 16

    key = jax.random.PRNGKey(0)
    kx, kw, kb = jax.random.split(key, 3)

    # Deterministic parameter init (matches nn.Conv2d shapes; uniform with
    # PyTorch's kaiming-uniform bound 1/sqrt(fan_in)).
    fan_in = inp * ker * ker
    bound = 1.0 / (fan_in ** 0.5)
    x = jax.random.normal(kx, (N, inp, H, W), dtype=jnp.float32)
    weight = jax.random.uniform(kw, (outp, inp, ker, ker),
                                minval=-bound, maxval=bound, dtype=jnp.float32)
    bias = jax.random.uniform(kb, (outp,),
                              minval=-bound, maxval=bound, dtype=jnp.float32)

    out = conv_forward(x, weight, bias)
    out = jax.block_until_ready(out)
    assert out.shape == (N, outp, H - ker + 1, W - ker + 1)

    # Same-precision reference (bf16 inputs, f32 accumulate) -> tight tolerance.
    ref_bf16 = jax.lax.conv_general_dilated(
        x.astype(jnp.bfloat16), weight.astype(jnp.bfloat16),
        window_strides=(1, 1), padding="VALID",
        dimension_numbers=("NCHW", "OIHW", "NCHW"),
        preferred_element_type=jnp.float32,
    ) + bias.reshape(1, outp, 1, 1)
    assert jnp.allclose(out, ref_bf16, atol=1e-3, rtol=1e-3)

    # Full-f32 reference -> looser tolerance, accounts only for the bf16
    # rounding of the MXU inputs (K=36 contraction).
    ref_f32 = jax.lax.conv_general_dilated(
        x, weight, window_strides=(1, 1), padding="VALID",
        dimension_numbers=("NCHW", "OIHW", "NCHW"),
    ) + bias.reshape(1, outp, 1, 1)
    assert jnp.allclose(out, ref_f32, atol=5e-2, rtol=5e-2)

    print("KERNEL_OK")
</pallas_src>

<mosaic_0001>
module attributes {stable_mosaic.version = 11 : i64} {
  func.func @_conv_matmul_kernel(%arg0: i32, %arg1: memref<8x36xbf16, #tpu.memory_space<vmem>>, %arg2: memref<36x512xbf16, #tpu.memory_space<vmem>>, %arg3: memref<8x1xf32, #tpu.memory_space<vmem>>, %arg4: memref<8x512xf32, #tpu.memory_space<vmem>>) attributes {dimension_semantics = [#tpu.dimension_semantics<arbitrary>], iteration_bounds = array<i64: 1>, scalar_prefetch = 0 : i64, scratch_operands = 0 : i64, tpu.core_type = #tpu.core_type<tc>, window_params = [{pipeline_mode = #tpu.pipeline_mode<synchronous>, transform_indices = @transform_0, window_bounds = array<i64: 8, 36>}, {pipeline_mode = #tpu.pipeline_mode<synchronous>, transform_indices = @transform_1, window_bounds = array<i64: 36, 512>}, {pipeline_mode = #tpu.pipeline_mode<synchronous>, transform_indices = @transform_2, window_bounds = array<i64: 8, 1>}, {pipeline_mode = #tpu.pipeline_mode<synchronous>, transform_indices = @transform_3, window_bounds = array<i64: 8, 512>}]} {
    %c0 = arith.constant 0 : index
    %c0_0 = arith.constant 0 : index
    %0 = vector.load %arg1[%c0, %c0_0] : memref<8x36xbf16, #tpu.memory_space<vmem>>, vector<8x36xbf16>
    %c0_1 = arith.constant 0 : index
    %c0_2 = arith.constant 0 : index
    %1 = vector.load %arg2[%c0_1, %c0_2] : memref<36x512xbf16, #tpu.memory_space<vmem>>, vector<36x512xbf16>
    %cst = arith.constant dense<0.000000e+00> : vector<8x512xf32>
    %2 = tpu.matmul %0, %1, %cst {dimension_numbers = #tpu.dot_dimension_numbers<[1], [0], [0], [1], [0, 0, 1, 1], [], []>} : vector<8x36xbf16>, vector<36x512xbf16>, vector<8x512xf32> -> vector<8x512xf32>
    %c0_3 = arith.constant 0 : index
    %c0_4 = arith.constant 0 : index
    %3 = vector.load %arg3[%c0_3, %c0_4] : memref<8x1xf32, #tpu.memory_space<vmem>>, vector<8x1xf32>
    %4 = vector.broadcast %3 : vector<8x1xf32> to vector<8x512xf32>
    %5 = arith.addf %2, %4 : vector<8x512xf32>
    %c0_5 = arith.constant 0 : index
    %c0_6 = arith.constant 0 : index
    %6 = vector.load %arg4[%c0_5, %c0_6] : memref<8x512xf32, #tpu.memory_space<vmem>>, vector<8x512xf32>
    tpu.vector_store %arg4[%c0_5, %c0_6], %5 {strides = array<i32>} : memref<8x512xf32, #tpu.memory_space<vmem>>, vector<8x512xf32>,
    return
  }
  func.func @transform_0(%arg0: i32) -> (i32, i32) {
    %c0_i32 = arith.constant 0 : i32
    %c0_i32_0 = arith.constant 0 : i32
    %c0_i32_1 = arith.constant 0 : i32
    return %c0_i32, %c0_i32_0 : i32, i32
  }
  func.func @transform_1(%arg0: i32) -> (i32, i32) {
    %c0_i32 = arith.constant 0 : i32
    %c0_i32_0 = arith.constant 0 : i32
    %c0_i32_1 = arith.constant 0 : i32
    return %c0_i32, %c0_i32_0 : i32, i32
  }
  func.func @transform_2(%arg0: i32) -> (i32, i32) {
    %c0_i32 = arith.constant 0 : i32
    %c0_i32_0 = arith.constant 0 : i32
    %c0_i32_1 = arith.constant 0 : i32
    return %c0_i32, %c0_i32_0 : i32, i32
  }
  func.func @transform_3(%arg0: i32) -> (i32, i32) {
    %c0_i32 = arith.constant 0 : i32
    %c0_i32_0 = arith.constant 0 : i32
    %c0_i32_1 = arith.constant 0 : i32
    return %c0_i32, %c0_i32_0 : i32, i32
  }
}

</mosaic_0001>

<bundles_post_ra>
// kernel: tpu_custom_call.1
= control target key start
LH: loop header
LB: loop body
LE: loop exit
PB: predicated region body
PF: predicated region fallthrough
CT: control target
= control target key end

     0   :  { %8 = vsyncpa [#allocation3], 0  ;;  %s360_s0 = inlined_call_operand.vmem [shape: bf16[8,36], index: 0, kind: input, shape index: {}]   ;;  %s361_s1 = inlined_call_operand.hbm [shape: bf16[36,512], index: 1, kind: input, shape index: {}]   ;;  %s362_s2 = inlined_call_operand.vmem [shape: f32[8,1], index: 2, kind: input, shape index: {}]   ;;  %s363_s3 = inlined_call_operand.hbm [shape: f32[8,512], index: 3, kind: output, shape index: {}]  }
   0x1   :  { %9 = vsyncpa [#allocation4], 0  ;;  %s301_s12 = smov [#allocation2]   ;;  %s253_s16 = scalar_lea.hbm %s361_s1, 1280 }
   0x2   :  { %s17_s13 = sshll.u32 %s301_s12, 4  ;;  %p254_p0 = scmp.ne.s32.totalorder %s361_s1, %s253_s16  ;;  %s18_s13 = int_to_ptr.vmem [resolvable:$true] %s17_s13 }
   0x3   :  { %p257_p1 = scmp.lt.u32.totalorder %s253_s16, %s361_s1 }
   0x5   :  { %p259_p2 = pnand %p257_p1, %p254_p0 }
   0x7   :  { %262 = shalt.err (!%p259_p2)
}
   0x8   :  { %s263_s21 = scalar_lea.vmem %s18_s13, 1280  ;;  %p268_p4 = scmp.lt.s32.totalorder %s18_s13, %s18_s13 }
   0x9   :  { %p264_p3 = scmp.ne.s32.totalorder %s18_s13, %s263_s21  ;;  %p269_p5 = scmp.lt.s32.totalorder %s263_s21, %s263_s21 }
   0xb   :  { %p270_p6 = por %p269_p5, %p268_p4 }
   0xd   :  { %p271_p7 = pnand %p270_p6, %p264_p3 }
   0xf   :  { %274 = shalt.err (!%p271_p7)
}
  0x10   :  { %s302_s22 = smov 256   ;;  %s303_s23 = smov 16  }
  0x11   :  { %23 = dma.hbm_to_vmem [thread:$0]  %s361_s1, 1280, %s18_s13, [#allocation3], %s302_s22, %s302_s22, %s303_s23  }
  0x12   :  { %297 = dma.done.wait [#allocation3], 1280  }
  0x13   :  { %298 = vsyncadd [#allocation3], 4294966016  ;;  %v304_v0 = vmov 0   ;;  %v237_v1 = vld [vmem:[#allocation2 + $0x4] ss:$16 sps:$4 sm:$0xff]   ;;  %vm101_vm0 = vcmask 1041408  }
  0x14   :  { %146 = vmatprep.mubr.bf16.mxu0 %v304_v0  ;;  %187 = vmatprep.mubr.bf16.mxu1 %v304_v0  ;;  %v239_v2 = vld [vmem:[#allocation2 + $0xc] ss:$16 sps:$4 sm:$0xff]   ;;  %v241_v3 = vld [vmem:[#allocation2] ss:$16 sps:$4 sm:$0xff]   ;;  %v242_v4 = vld [vmem:[#allocation2 + $0x8] ss:$16 sps:$4 sm:$0xff]  }
  0x15   :  { %236 = vset.pattern.permute.xlu0 %v304_v0  ;;  %114 = vmatprep.subr.bf16.mxu0 %v237_v1  ;;  %v243_v5 = vld [vmem:[#allocation2 + $0x24] ss:$16 sps:$4 sm:$0xff]   ;;  %v245_v6 = vld [vmem:[#allocation2 + $0x2c] ss:$16 sps:$4 sm:$0xff]   ;;  %v247_v7 = vld [vmem:[#allocation2 + $0x20] ss:$16 sps:$4 sm:$0xff]  }
  0x16   :  { %155 = vmatprep.subr.bf16.mxu1 %v239_v2  ;;  %115 = vmatpush1.bf16.msra.mxu0 %v241_v3  ;;  %v248_v8 = vld [vmem:[#allocation2 + $0x28] ss:$16 sps:$4 sm:$0xff]   ;;  %v39_v9 = vld [vmem:[#allocation2 + $0x40] sm:$0x33]  ;;  %vm97_vm1 = vcmask 293888  }
  0x17   :  { %156 = vmatpush1.bf16.msra.mxu1 %v242_v4  ;;  %116 = vmatprep.subr.bf16.mxu0 %v243_v5  ;;  %v40_v10 = vld [vmem:[#allocation2 + $0x48] sm:$0x33]  ;;  %v224_v11 = vcombine.high %v39_v9, %v39_v9  ;;  %v223_v13 = vcombine.low %v39_v9, %v39_v9  ;;  %v41_v15 = vld [vmem:[%s362_s2] sm:$0xff]  ;;  %s305_s2 = smov [#allocation5]  }
  0x18   :  { %157 = vmatprep.subr.bf16.mxu1 %v245_v6  ;;  %v226_v12 = vcombine.high %v40_v10, %v40_v10  ;;  %v225_v14 = vcombine.low %v40_v10, %v40_v10  ;;  %44 = vperm.xlu0 %236, %v41_v15   ;;  %v30_v18 = vld [vmem:[%s360_s0] sm:$0xf]  ;;  %s206_s29 = sshll.u32 %s305_s2, 4  ;;  %s207_s29 = int_to_ptr.vmem [resolvable:$true] %s206_s29 }
  0x19   :  { %v103_v16 = vsel %vm101_vm0, %v223_v13, 0  ;;  %s275_s0 = scalar_lea.vmem %s207_s29, 512  ;;  %p280_p9 = scmp.lt.s32.totalorder %s207_s29, %s207_s29 }
  0x1a   :  { %117 = vmatpush1.bf16.msra.mxu0 %v247_v7  ;;  %v109_v17 = vsel %vm101_vm0, %v225_v14, 0  ;;  %p276_p8 = scmp.ne.s32.totalorder %s207_s29, %s275_s0  ;;  %p281_p10 = scmp.lt.s32.totalorder %s275_s0, %s275_s0 }
  0x1b   :  { %158 = vmatpush1.bf16.msra.mxu1 %v248_v8  ;;  %227 = vmatprep.subr.msk.bf16.mxu0 %vm101_vm0, %v224_v11 }
  0x1c   :  { %229 = vmatprep.subr.msk.bf16.mxu1 %vm101_vm0, %v226_v12  ;;  %p282_p11 = por %p281_p10, %p280_p9 }
  0x1e   :  { %119 = vmatpush1.bf16.msra.mxu0 %v103_v16  ;;  %p283_p12 = pnand %p282_p11, %p276_p8 }
  0x1f   :  { %160 = vmatpush1.bf16.msra.mxu1 %v109_v17 }
  0x21   :  { %228 = vmatmul.mubr.msk.bf16.vlgmr.msra.gmra.mrb[0].mxu0 %vm97_vm1, %v30_v18 }
  0x22   :  { %230 = vmatmul.mubr.msk.bf16.vlgmr.msra.gmra.mrb[0].mxu1 %vm97_vm1, %v30_v18 }
  0x97   :  { %v45_v19 = vpop.permute.xlu0 %44 }
  0xf4   :  { %v148_v20 = vpop.f32.mrb[0].mxu0 }
  0xf5   :  { %v189_v21 = vpop.f32.mrb[0].mxu1  ;;  %v149_v22 = vadd.f32 %v148_v20, %v45_v19  ;;  %v150_v24 = vpop.f32.mrb[1].mxu0 }
  0xf6   :  { %v190_v23 = vadd.f32 %v189_v21, %v45_v19  ;;  %v191_v25 = vpop.f32.mrb[1].mxu1  ;;  %v151_v26 = vadd.f32 %v150_v24, %v45_v19  ;;  %v152_v28 = vpop.f32.mrb[2].mxu0 }
  0xf7   :  { %v192_v27 = vadd.f32 %v191_v25, %v45_v19  ;;  %v193_v29 = vpop.f32.mrb[2].mxu1  ;;  %196 = vst [vmem:[#allocation5] sm:$0xff] %v149_v22  ;;  %v153_v30 = vpop.f32.mrb[3].mxu0 }
  0xf8   :  { %198 = vst [vmem:[#allocation5 + $0x10] sm:$0xff] %v190_v23  ;;  %v194_v31 = vpop.f32.mrb[3].mxu1  ;;  %197 = vst [vmem:[#allocation5 + $0x8] sm:$0xff] %v151_v26 }
  0xf9   :  { %199 = vst [vmem:[#allocation5 + $0x18] sm:$0xff] %v192_v27 }
  0xfa   :  { %286 = shalt.err (!%p283_p12)
}
  0xfb   :  { %s287_s5 = scalar_lea.hbm %s363_s3, 512 }
  0xfc   :  { %p288_p13 = scmp.ne.s32.totalorder %s363_s3, %s287_s5  ;;  %p291_p0 = scmp.lt.u32.totalorder %s287_s5, %s363_s3 }
  0xfe   :  { %p293_p1 = pnand %p291_p0, %p288_p13 }
 0x100   :  { %296 = shalt.err (!%p293_p1)
}
 0x101   :  { %209 = dma.vmem_to_hbm [thread:$0]  %s207_s29, 512, %s363_s3, [#allocation4]  }
 0x102   :  { %299 = dma.done.wait [#allocation4], 512  }
 0x103   :  { %300 = vsyncadd [#allocation4], 4294966784 }
 0x104   :  { %213 = vsyncpa [#allocation3], 1 }
 0x105   :  { %214 = vsyncpa [#allocation4], 1 }

</bundles_post_ra>
